<compile_context>
chip_gen: v7x
topology: tpu7x:2x2x1
jax: 0.10.0
libtpu: 0.0.40
codegen_flags: <defaults>
</compile_context>

<pallas_src>
import math
import functools

import jax
import jax.numpy as jnp
from jax import lax
from jax.experimental import pallas as pl
from jax.experimental.pallas import tpu as pltpu


# ----------------------------------------------------------------------------
# Kernel A: fused stacked projection  y[g] = x[g] @ Wt[g]   (Wt already (d_model, N))
# ----------------------------------------------------------------------------
def _qkv_proj_kernel(x_ref, wt_ref, o_ref):
    # x_ref: (1, TM, d_model)   wt_ref: (1, d_model, N)   o_ref: (1, TM, N)
    o_ref[0] = jnp.dot(
        x_ref[0], wt_ref[0], preferred_element_type=jnp.float32
    ).astype(o_ref.dtype)


def _row_tile(rows):
    if rows < 128:
        return rows  # single full-extent tile (allowed: equals full array dim)
    try:
        is_v5 = "v5" in jax.devices()[0].device_kind.lower()
    except Exception:  # pragma: no cover - defensive
        is_v5 = False
    big = 128 if is_v5 else 256
    return big if rows >= big else 128


def _fused_proj(x_stk, wt_stk, out_dtype=jnp.float32):
    """x_stk: (G, R, d_model), wt_stk: (G, d_model, N) -> (G, R, N), lane-dense output."""
    G, R, d_model = x_stk.shape
    N = wt_stk.shape[-1]
    tm = _row_tile(R)

    return pl.pallas_call(
        _qkv_proj_kernel,
        out_shape=jax.ShapeDtypeStruct((G, R, N), out_dtype),
        grid_spec=pltpu.PrefetchScalarGridSpec(
            num_scalar_prefetch=0,
            grid=(G, pl.cdiv(R, tm)),
            in_specs=[
                pl.BlockSpec((1, tm, d_model), lambda g, r: (g, r, 0)),
                # Weight block changes only with g -> stays resident across the row tiles.
                pl.BlockSpec((1, d_model, N), lambda g, r: (g, 0, 0)),
            ],
            out_specs=pl.BlockSpec((1, tm, N), lambda g, r: (g, r, 0)),
        ),
        compiler_params=pltpu.CompilerParams(
            dimension_semantics=("parallel", "parallel")),
    )(x_stk, wt_stk)


# ----------------------------------------------------------------------------
# Kernel B: per-batch attention scores for ALL heads per step
#   S[b, h] = (Q_slab[b][:, h*d_k:(h+1)*d_k] @ K_slab[b][:, h*d_k:(h+1)*d_k]^T) / sqrt(d_k)
# ----------------------------------------------------------------------------
def _scores_kernel(q_ref, k_ref, o_ref, *, n_heads, d_k, scale):
    # q_ref: (1, TQ, H*d_k)   k_ref: (1, Sk, H*d_k)   o_ref: (1, H, TQ, Sk)
    q = q_ref[0]  # (TQ, H*d_k) resident VMEM value
    k = k_ref[0]  # (Sk, H*d_k)
    for h in range(n_heads):  # static unroll; static 64-lane window slices
        qh = q[:, h * d_k:(h + 1) * d_k]
        kh = k[:, h * d_k:(h + 1) * d_k]
        s = lax.dot_general(
            qh, kh,
            dimension_numbers=(((1,), (1,)), ((), ())),
            preferred_element_type=jnp.float32,
        )  # (TQ, Sk)
        o_ref[0, h] = (s * scale).astype(o_ref.dtype)


def _head_scores(q_bsn, k_bsn, *, n_heads, d_k, scale):
    B, Sq, N = q_bsn.shape
    _, Sk, _ = k_bsn.shape
    tq = Sq if Sq < 128 else 128

    return pl.pallas_call(
        functools.partial(_scores_kernel, n_heads=n_heads, d_k=d_k, scale=scale),
        out_shape=jax.ShapeDtypeStruct((B, n_heads, Sq, Sk), jnp.float32),
        grid_spec=pltpu.PrefetchScalarGridSpec(
            num_scalar_prefetch=0,
            grid=(B, pl.cdiv(Sq, tq)),
            in_specs=[
                pl.BlockSpec((1, tq, N), lambda b, qi: (b, qi, 0)),
                pl.BlockSpec((1, Sk, N), lambda b, qi: (b, 0, 0)),
            ],
            out_specs=pl.BlockSpec((1, n_heads, tq, Sk), lambda b, qi: (b, 0, qi, 0)),
        ),
        compiler_params=pltpu.CompilerParams(
            dimension_semantics=("parallel", "parallel")),
    )(q_bsn, k_bsn)


# ----------------------------------------------------------------------------
# Wrapper: Linear0inWorker1.forward
# ----------------------------------------------------------------------------
def linear0_worker1_forward(input_Q, input_K, input_V,
                            W_Q, W_K, W_V,
                            *, n_heads, d_k, d_v):
    """Pallas-backed equivalent of Linear0inWorker1.forward.

    W_Q, W_K, W_V use the PyTorch nn.Linear convention: (out_features, in_features).
    Returns (scores, V):
      scores: (batch, n_heads, seq_q, seq_k)
      V     : (batch, n_heads, seq_v, d_v)
    """
    B, Sq, d_model = input_Q.shape
    _, Sk, _ = input_K.shape
    _, Sv, _ = input_V.shape
    N = n_heads * d_k
    assert d_k == d_v, "fused stacked projection assumes d_k == d_v (true for this module)"

    scale = 1.0 / math.sqrt(d_k)

    if Sq == Sk == Sv:
        # Fused path: one launch for all three projections.
        x_stk = jnp.stack([
            input_Q.reshape(B * Sq, d_model),
            input_K.reshape(B * Sk, d_model),
            input_V.reshape(B * Sv, d_model),
        ])                                                     # (3, R, d_model)
        wt_stk = jnp.stack([W_Q.T, W_K.T, W_V.T])              # (3, d_model, N)
        slabs = _fused_proj(x_stk, wt_stk)                     # (3, R, N)
        q_slab, k_slab, v_slab = slabs[0], slabs[1], slabs[2]
    else:
        # Rare fallback (unequal seq lengths): same kernel, stack axis of size 1 each.
        q_slab = _fused_proj(input_Q.reshape(1, B * Sq, d_model), W_Q.T[None])[0]
        k_slab = _fused_proj(input_K.reshape(1, B * Sk, d_model), W_K.T[None])[0]
        v_slab = _fused_proj(input_V.reshape(1, B * Sv, d_model), W_V.T[None])[0]

    # Free metadata reshapes; no HBM transposes for Q/K (head split happens in kernel B).
    q_bsn = q_slab.reshape(B, Sq, N)
    k_bsn = k_slab.reshape(B, Sk, N)
    # V's (B, H, Sv, d_v) layout is part of the returned contract -> single wrapper transpose.
    V = v_slab.reshape(B, Sv, n_heads, d_v).transpose(0, 2, 1, 3)

    scores = _head_scores(q_bsn, k_bsn, n_heads=n_heads, d_k=d_k, scale=scale)
    return scores, V


def _reference(input_Q, input_K, input_V, W_Q, W_K, W_V, *, n_heads, d_k, d_v):
    B, Sq, _ = input_Q.shape
    Q = (input_Q @ W_Q.T).reshape(B, -1, n_heads, d_k).transpose(0, 2, 1, 3)
    K = (input_K @ W_K.T).reshape(B, -1, n_heads, d_k).transpose(0, 2, 1, 3)
    V = (input_V @ W_V.T).reshape(B, -1, n_heads, d_v).transpose(0, 2, 1, 3)
    scores = jnp.einsum('bhqd,bhkd->bhqk', Q, K) / jnp.sqrt(jnp.float32(d_k))
    return scores, V


if __name__ == "__main__":
    d_model, d_k, d_v, n_heads = 256, 64, 64, 8
    batch, seq = 2, 8

    key = jax.random.PRNGKey(0)
    kq, kk, kv, kwq, kwk, kwv, kfc = jax.random.split(key, 7)

    input_Q = jax.random.normal(kq, (batch, seq, d_model), dtype=jnp.float32)
    input_K = jax.random.normal(kk, (batch, seq, d_model), dtype=jnp.float32)
    input_V = jax.random.normal(kv, (batch, seq, d_model), dtype=jnp.float32)

    # Deterministic parameter init, nn.Linear convention (out_features, in_features),
    # uniform(-1/sqrt(in), 1/sqrt(in)).
    bound = 1.0 / math.sqrt(d_model)
    W_Q = jax.random.uniform(kwq, (d_k * n_heads, d_model), jnp.float32, -bound, bound)
    W_K = jax.random.uniform(kwk, (d_k * n_heads, d_model), jnp.float32, -bound, bound)
    W_V = jax.random.uniform(kwv, (d_v * n_heads, d_model), jnp.float32, -bound, bound)
    # fc is defined in the module but never used in forward; kept for parity.
    fc_bound = 1.0 / math.sqrt(d_v * n_heads)
    W_fc = jax.random.uniform(kfc, (d_model, d_v * n_heads), jnp.float32, -fc_bound, fc_bound)

    scores, V = linear0_worker1_forward(
        input_Q, input_K, input_V, W_Q, W_K, W_V,
        n_heads=n_heads, d_k=d_k, d_v=d_v)
    jax.block_until_ready((scores, V))

    scores_ref, V_ref = _reference(
        input_Q, input_K, input_V, W_Q, W_K, W_V,
        n_heads=n_heads, d_k=d_k, d_v=d_v)

    assert scores.shape == (batch, n_heads, seq, seq)
    assert V.shape == (batch, n_heads, seq, d_v)
    assert jnp.allclose(scores, scores_ref, atol=1e-4, rtol=1e-4)
    assert jnp.allclose(V, V_ref, atol=1e-4, rtol=1e-4)

    print("KERNEL_OK")
</pallas_src>

<mosaic_0001>
module attributes {stable_mosaic.version = 11 : i64} {
  func.func @_qkv_proj_kernel(%arg0: i32, %arg1: i32, %arg2: memref<1x16x256xf32, #tpu.memory_space<vmem>>, %arg3: memref<1x256x512xf32, #tpu.memory_space<vmem>>, %arg4: memref<1x16x512xf32, #tpu.memory_space<vmem>>) attributes {dimension_semantics = [#tpu.dimension_semantics<parallel>, #tpu.dimension_semantics<parallel>], iteration_bounds = array<i64: 3, 1>, scalar_prefetch = 0 : i64, scratch_operands = 0 : i64, tpu.core_type = #tpu.core_type<tc>, window_params = [{transform_indices = @transform_0, window_bounds = array<i64: 1, 16, 256>}, {transform_indices = @transform_1, window_bounds = array<i64: 1, 256, 512>}, {transform_indices = @transform_2, window_bounds = array<i64: 1, 16, 512>}]} {
    %c0 = arith.constant 0 : index
    %c0_0 = arith.constant 0 : index
    %c0_1 = arith.constant 0 : index
    %0 = vector.load %arg2[%c0, %c0_0, %c0_1] : memref<1x16x256xf32, #tpu.memory_space<vmem>>, vector<1x16x256xf32>
    %1 = vector.shape_cast %0 : vector<1x16x256xf32> to vector<16x256xf32>
    %c0_2 = arith.constant 0 : index
    %c0_3 = arith.constant 0 : index
    %c0_4 = arith.constant 0 : index
    %2 = vector.load %arg3[%c0_2, %c0_3, %c0_4] : memref<1x256x512xf32, #tpu.memory_space<vmem>>, vector<1x256x512xf32>
    %3 = vector.shape_cast %2 : vector<1x256x512xf32> to vector<256x512xf32>
    %cst = arith.constant dense<0.000000e+00> : vector<16x512xf32>
    %4 = tpu.matmul %1, %3, %cst {dimension_numbers = #tpu.dot_dimension_numbers<[1], [0], [0], [1], [0, 0, 1, 1], [], []>} : vector<16x256xf32>, vector<256x512xf32>, vector<16x512xf32> -> vector<16x512xf32>
    %c0_5 = arith.constant 0 : index
    %c0_6 = arith.constant 0 : index
    %c0_7 = arith.constant 0 : index
    %5 = vector.load %arg4[%c0_5, %c0_6, %c0_7] : memref<1x16x512xf32, #tpu.memory_space<vmem>>, vector<1x16x512xf32>
    %6 = vector.shape_cast %5 : vector<1x16x512xf32> to vector<16x512xf32>
    %7 = vector.shape_cast %4 : vector<16x512xf32> to vector<1x16x512xf32>
    tpu.vector_store %arg4[%c0_5, %c0_6, %c0_7], %7 {strides = array<i32>} : memref<1x16x512xf32, #tpu.memory_space<vmem>>, vector<1x16x512xf32>,
    return
  }
  func.func @transform_0(%arg0: i32, %arg1: i32) -> (i32, i32, i32) {
    %c0_i32 = arith.constant 0 : i32
    %c0_i32_0 = arith.constant 0 : i32
    return %arg0, %arg1, %c0_i32 : i32, i32, i32
  }
  func.func @transform_1(%arg0: i32, %arg1: i32) -> (i32, i32, i32) {
    %c0_i32 = arith.constant 0 : i32
    %c0_i32_0 = arith.constant 0 : i32
    %c0_i32_1 = arith.constant 0 : i32
    return %arg0, %c0_i32, %c0_i32_0 : i32, i32, i32
  }
  func.func @transform_2(%arg0: i32, %arg1: i32) -> (i32, i32, i32) {
    %c0_i32 = arith.constant 0 : i32
    %c0_i32_0 = arith.constant 0 : i32
    return %arg0, %arg1, %c0_i32 : i32, i32, i32
  }
}

</mosaic_0001>

<bundles_post_ra>
// kernel: tpu_custom_call.1
= control target key start
LH: loop header
LB: loop body
LE: loop exit
PB: predicated region body
PF: predicated region fallthrough
CT: control target
= control target key end

     0   :  { %7 = vsyncpa [#allocation3], 0  ;;  %s1399_s0 = inlined_call_operand.hbm [shape: f32[3,16,256], index: 0, kind: input, shape index: {}]   ;;  %s1400_s1 = inlined_call_operand.hbm [shape: f32[3,256,512], index: 1, kind: input, shape index: {}]   ;;  %s1401_s2 = inlined_call_operand.hbm [shape: f32[3,16,512], index: 2, kind: output, shape index: {}]  }
   0x1   :  { %9 = vsyncpa [#allocation3 + $0x1], 0 }
   0x2   :  { %10 = vsyncpa [#allocation6], 0 }
   0x3   :  { %12 = vsyncpa [#allocation6 + $0x1], 0 }
   0x4   :  { %13 = vsyncpa [#allocation4], 0 }
   0x5   :  { %15 = vsyncpa [#allocation4 + $0x1], 0  ;;  %s1039_s9 = smov 0   ;;  %s1041_s10 = smov 0  }
   0x6   :  { %s1043_s11 = smov 0   ;;  %s1045_s12 = smov 0  }
   0x7   :  { %s1047_s13 = smov 0   ;;  %s1049_s14 = smov 0  }
   0x8 LB: > { %s644_s15 = sadd.s32 4294967295, %s1013_s14   ;;  %s645_s16 = sadd.s32 4294967294, %s1013_s14   ;;  %s1013_s14 = sphi %s1049_s14, %s21_s14   ;;  %s1009_s13 = sphi %s1047_s13, %s1418_s13   ;;  %s1005_s12 = sphi %s1045_s12, %s1417_s12   ;;  %s1001_s11 = sphi %s1043_s11, %s1416_s11   ;;  %s997_s10 = sphi %s1041_s10, %s1415_s10   ;;  %s993_s9 = sphi %s1039_s9, %s1414_s9  }
   0x9   : > { %s33_s17 = sadd.s32 1, %s1009_s13  ;;  %s42_s18 = sadd.s32 1, %s1001_s11 }
   0xa   : > { %p35_p0 = scmp.ge.s32.totalorder %s33_s17, 3  ;;  %p49_p1 = scmp.ne.s32.totalorder %s1001_s11, %s997_s10 }
   0xb   : > { %p50_p2 = scmp.eq.s32.totalorder %s1013_s14, 0  ;;  %p55_p3 = scmp.ne.s32.totalorder %s997_s10, %s993_s9 }
   0xc   : > { %s1420_s17 = smov (%p35_p0, %s33_s17), 0  ;;  %p56_p5 = scmp.eq.s32.totalorder %s644_s15, 0 }
   0xd   : > { %p1080_p4 = por %p50_p2, %p49_p1  ;;  %s37_s20 = ssub.s32 %s1009_s13, %s1420_s17 }
   0xe   : > { %p107_p6 = scmp.eq.s32.totalorder %s644_s15, 2  ;;  %p40_p7 = scmp.eq.s32.totalorder %s37_s20, 0 }
   0xf   : > { %p1086_p8 = por %p56_p5, %p55_p3  ;;  %p113_p10 = scmp.eq.s32.totalorder %s645_s16, 2 }
  0x10   : > { %p1090_p9 = por %p107_p6, %p49_p1  ;;  %p811_p12 = scmp.lt.s32.totalorder %s1013_s14, 3 }
  0x11   : > { %s1405_s21 = scalar_select %p1086_p8, 1, 0 }
  0x12   : > { %s1406_s22 = scalar_select %p1090_p9, 1, 0 }
  0x13   : > { %s1095_s23 = scalar_select %p40_p7, %s1001_s11, %s42_s18  }
  0x14   : > { %p1097_p11 = por %p113_p10, %p55_p3  ;;  %s1103_s25 = sand.u32 1, %s1001_s11  }
  0x15   : > { %s648_s26 = sshll.u32 %s1103_s25, 5  ;;  %s663_s27 = sshll.u32 %s1009_s13, 9 }
  0x16   : > { %s1407_s24 = scalar_select %p1097_p11, 1, 0 }
  0x17   : > { %s1110_s30 = scalar_lea.hbm %s1399_s0, %s663_s27  ;;  %s137_s3 = scalar_lea.vmem [#allocation2], %s648_s26 }
  0x18   : > { %s147_s4 = sshll.u32 %s137_s3, 4  ;;  %p1116_p13 = pnand %p811_p12, %p1080_p4  ;;  %s1112_s4 = int_to_ptr.vmem [resolvable:$true] %s147_s4 }
  0x19   : > { %s134_s6 = scalar_lea.sflag [#allocation3], %s1103_s25  ;;  %s867_s7 = scalar_lea.hbm %s1110_s30, 512 }
  0x1a   : > { %p868_p1 = scmp.ne.s32.totalorder %s1110_s30, %s867_s7  ;;  %p869_p2 = pneg %p1116_p13 }
  0x1b   : > { %s872_s16 = scalar_lea.hbm %s1399_s0, 1536  ;;  %p873_p4 = scmp.lt.u32.totalorder %s1110_s30, %s1399_s0 }
  0x1c   : > { %p870_p3 = pnand %p869_p2, %p868_p1  ;;  %p874_p6 = scmp.lt.u32.totalorder %s872_s16, %s867_s7 }
  0x1d   : > { %p876_p10 = scmp.lt.u32.totalorder %s867_s7, %s1110_s30 }
  0x1e   : > { %p871_p5 = pneg %p870_p3  ;;  %p875_p7 = por %p874_p6, %p873_p4 }
  0x20   : > { %p877_p12 = por %p876_p10, %p875_p7 }
  0x22   : > { %p878_p0 = pnand %p877_p12, %p871_p5 }
  0x24   : > { %881 = shalt.err (!%p878_p0)
}
  0x25   : > { %s882_s20 = scalar_lea.vmem %s1112_s4, 512  ;;  %s1015_s26 = smov [#allocation2]  }
  0x26   : > { %p883_p1 = scmp.ne.s32.totalorder %s1112_s4, %s882_s20  ;;  %s887_s27 = sshll.u32 %s1015_s26, 4  ;;  %s888_s27 = int_to_ptr.vmem [resolvable:$false] %s887_s27 }
  0x27   : > { %s889_s28 = scalar_lea.vmem %s888_s27, 1024  ;;  %p890_p9 = scmp.lt.s32.totalorder %s1112_s4, %s888_s27 }
  0x28   : > { %p885_p3 = pnand %p883_p1, %p869_p2  ;;  %p891_p4 = scmp.lt.s32.totalorder %s889_s28, %s882_s20 }
  0x2a   : > { %p886_p11 = pneg %p885_p3  ;;  %p892_p6 = por %p891_p4, %p890_p9 }
  0x2c   : > { %p893_p7 = pnand %p892_p6, %p886_p11 }
  0x2e   : > { %896 = shalt.err (!%p893_p7)
}
  0x2f   : > { %s1016_s29 = smov 256   ;;  %s1017_s3 = smov 16  }
  0x30   : > { %803 = dma.hbm_to_vmem [thread:$0]  (!%p1116_p13), %s1110_s30, 512, %s1112_s4, %s134_s6, %s1016_s29, %s1016_s29, %s1017_s3  }
  0x31   : > { %p176_p0 = scmp.lt.s32.totalorder %s1013_s14, 4  ;;  %s651_s7 = sshll.u32 %s1103_s25, 10 }
  0x32   : > { %s664_s8 = sshll.u32 %s1009_s13, 14  ;;  %p1409_p9 = scmp.ge.s32.totalorder %s1013_s14, 1 }
  0x33   : > { %s1161_s19 = scalar_lea.hbm %s1400_s1, %s664_s8  ;;  %s161_s20 = scalar_lea.vmem [#allocation5], %s651_s7 }
  0x34   : > { %p1154_p11 = pnand %p1409_p9, %p176_p0  ;;  %s168_s26 = sshll.u32 %s161_s20, 4  ;;  %s1163_s26 = int_to_ptr.vmem [resolvable:$true] %s168_s26 }
  0x35   : > { %s158_s30 = scalar_lea.sflag [#allocation6], %s1103_s25  ;;  %s897_s4 = scalar_lea.hbm %s1161_s19, 16384 }
  0x36   : > { %p898_p5 = scmp.ne.s32.totalorder %s1161_s19, %s897_s4  ;;  %s902_s28 = scalar_lea.hbm %s1400_s1, 49152 }
  0x37   : > { %p903_p1 = scmp.lt.u32.totalorder %s1161_s19, %s1400_s1  ;;  %p904_p3 = scmp.lt.u32.totalorder %s902_s28, %s897_s4 }
  0x38   : > { %p900_p10 = pnand %p898_p5, %p869_p2  ;;  %p906_p6 = scmp.lt.u32.totalorder %s897_s4, %s1161_s19 }
  0x39   : > { %p905_p4 = por %p904_p3, %p903_p1 }
  0x3a   : > { %p901_p12 = pneg %p900_p10 }
  0x3b   : > { %p907_p7 = por %p906_p6, %p905_p4 }
  0x3d   : > { %p908_p0 = pnand %p907_p7, %p901_p12 }
  0x3f   : > { %911 = shalt.err (!%p908_p0)
}
  0x40   : > { %s912_s7 = scalar_lea.vmem %s1163_s26, 16384  ;;  %s1018_s8 = smov [#allocation5]  }
  0x41   : > { %p913_p9 = scmp.ne.s32.totalorder %s1163_s26, %s912_s7  ;;  %s917_s16 = sshll.u32 %s1018_s8, 4  ;;  %s918_s16 = int_to_ptr.vmem [resolvable:$false] %s917_s16 }
  0x42   : > { %s919_s18 = scalar_lea.vmem %s918_s16, 32768  ;;  %p920_p8 = scmp.lt.s32.totalorder %s1163_s26, %s918_s16 }
  0x43   : > { %p915_p5 = pnand %p913_p9, %p869_p2  ;;  %p921_p1 = scmp.lt.s32.totalorder %s919_s18, %s912_s7 }
  0x45   : > { %p916_p10 = pneg %p915_p5  ;;  %p922_p3 = por %p921_p1, %p920_p8 }
  0x47   : > { %p923_p4 = pnand %p922_p3, %p916_p10 }
  0x49   : > { %926 = shalt.err (!%p923_p4)
}
  0x4a   : > { %s1019_s20 = smov 512   ;;  %s1020_s4 = smov 32  }
  0x4b   : > { %806 = dma.hbm_to_vmem [thread:$0]  (!%p1116_p13), %s1161_s19, 16384, %s1163_s26, %s158_s30, %s1019_s20, %s1019_s20, %s1020_s4  }
  0x4c   : > { %180 = sbr.rel (%p1154_p11) target bundleno = 388 (0x184), region = 28  ;;  %s1194_s6 = sand.u32 (!%p1154_p11), 1, %s997_s10  }
  0x4d   : > { %s655_s27 = sshll.u32 (!%p1154_p11), %s1194_s6, 5  ;;  %s183_s28 = scalar_lea.sflag (!%p1154_p11), [#allocation3], %s1194_s6 }
  0x4e   : > { %s1198_s29 = scalar_lea.vmem (!%p1154_p11), [#allocation2], %s655_s27  ;;  %p1411_p8 = scmp.ne.s32.totalorder (!%p1154_p11), %s1405_s21, 0 }
  0x53   : > { %980 = dma.done.wait (%p1411_p8), %s183_s28, 512  }
  0x54   : > { %982 = vsyncadd (%p1411_p8), %s183_s28, 4294966784  ;;  %s656_s25 = sshll.u32 %s1194_s6, 10  ;;  %s192_s5 = scalar_lea.sflag [#allocation6], %s1194_s6 }
  0x55   : > { %s1206_s15 = scalar_lea.vmem [#allocation5], %s656_s25 }
  0x56   : > { %984 = dma.done.wait (%p1411_p8), %s192_s5, 16384  }
  0x57   : > { %986 = vsyncadd (%p1411_p8), %s192_s5, 4294950912  ;;  %v228_v0 = vld [vmem:[%s1206_s15 + $0x8] sm:$0xff]  ;;  %v230_v2 = vld [vmem:[%s1206_s15 + $0x18] sm:$0xff]  ;;  %s657_s21 = sshll.u32 %s1194_s6, 6  ;;  %s665_s30 = sshll.u32 %s1005_s12, 10 }
  0x58   : > { %v232_v1 = vld [vmem:[%s1206_s15 + $0x28] sm:$0xff]  ;;  %v234_v4 = vld [vmem:[%s1206_s15 + $0x38] sm:$0xff]  ;;  %v227_v5 = vld [vmem:[%s1206_s15] sm:$0xff]  ;;  %s220_s19 = scalar_lea.vmem [#allocation7], %s657_s21  ;;  %s1351_s8 = scalar_lea.hbm %s1401_s2, %s665_s30 }
  0x59   : > { %v666_v3 = vpack.c.bf16 %v232_v1, %v228_v0  ;;  %v231_v6 = vld [vmem:[%s1206_s15 + $0x20] sm:$0xff]  ;;  %v730_v7 = vpack.c.bf16 %v234_v4, %v230_v2  ;;  %v229_v9 = vld [vmem:[%s1206_s15 + $0x10] sm:$0xff]  ;;  %v236_v11 = vld [vmem:[%s1206_s15 + $0x48] sm:$0xff]  ;;  %s534_s26 = sshll.u32 %s220_s19, 4  ;;  %s518_s12 = scalar_lea.sflag [#allocation4], %s1194_s6  ;;  %s1346_s26 = int_to_ptr.vmem [resolvable:$true] %s534_s26 }
  0x5a   : > { %v668_v8 = vpack.c.bf16 %v231_v6, %v227_v5  ;;  %v233_v10 = vld [vmem:[%s1206_s15 + $0x30] sm:$0xff]  ;;  %v240_v13 = vld [vmem:[%s1206_s15 + $0x68] sm:$0xff]  ;;  %v238_v14 = vld [vmem:[%s1206_s15 + $0x58] sm:$0xff]  ;;  %s927_s16 = scalar_lea.vmem %s1346_s26, 1024  ;;  %p1412_p2 = scmp.ne.s32.totalorder %s1406_s22, 0 }
  0x5b   : > { %667 = vmatprep.subr.bf16.mxu0 %v666_v3  ;;  %v732_v12 = vpack.c.bf16 %v233_v10, %v229_v9  ;;  %v242_v15 = vld [vmem:[%s1206_s15 + $0x78] sm:$0xff]  ;;  %731 = vmatprep.subr.bf16.mxu1 %v730_v7  ;;  %v670_v16 = vpack.c.bf16 %v240_v13, %v236_v11  ;;  %v235_v18 = vld [vmem:[%s1206_s15 + $0x40] sm:$0xff]  ;;  %v237_v20 = vld [vmem:[%s1206_s15 + $0x50] sm:$0xff]  ;;  %p928_p13 = scmp.ne.s32.totalorder %s1346_s26, %s927_s16  ;;  %s1021_s18 = smov [#allocation7]  }
  0x5c   : > { %669 = vmatpush1.bf16.msra.mxu0 %v668_v8  ;;  %v734_v17 = vpack.c.bf16 %v242_v15, %v238_v14  ;;  %v239_v19 = vld [vmem:[%s1206_s15 + $0x60] sm:$0xff]  ;;  %v241_v22 = vld [vmem:[%s1206_s15 + $0x70] sm:$0xff]  ;;  %v244_v23 = vld [vmem:[%s1206_s15 + $0x88] sm:$0xff]  ;;  %s931_s20 = sshll.u32 %s1021_s18, 4  ;;  %s932_s20 = int_to_ptr.vmem [resolvable:$false] %s931_s20 }
  0x5d   : > { %733 = vmatpush1.bf16.msra.mxu1 %v732_v12  ;;  %v672_v21 = vpack.c.bf16 %v239_v19, %v235_v18  ;;  %v248_v24 = vld [vmem:[%s1206_s15 + $0xa8] sm:$0xff]  ;;  %671 = vmatprep.subr.bf16.mxu0 %v670_v16  ;;  %v736_v25 = vpack.c.bf16 %v241_v22, %v237_v20  ;;  %v246_v27 = vld [vmem:[%s1206_s15 + $0x98] sm:$0xff]  ;;  %v243_v29 = vld [vmem:[%s1206_s15 + $0x80] sm:$0xff]  ;;  %p929_p11 = pnand %p928_p13, %p1412_p2  ;;  %s933_s4 = scalar_lea.vmem %s932_s20, 2048 }
  0x5e   : > { %735 = vmatprep.subr.bf16.mxu1 %v734_v17  ;;  %v674_v26 = vpack.c.bf16 %v248_v24, %v244_v23  ;;  %v250_v28 = vld [vmem:[%s1206_s15 + $0xb8] sm:$0xff]  ;;  %v247_v31 = vld [vmem:[%s1206_s15 + $0xa0] sm:$0xff]  ;;  %v245_v32 = vld [vmem:[%s1206_s15 + $0x90] sm:$0xff]  ;;  %p934_p6 = scmp.lt.s32.totalorder %s1346_s26, %s932_s20  ;;  %p935_p7 = scmp.lt.s32.totalorder %s933_s4, %s927_s16 }
  0x5f   : > { %v738_v30 = vpack.c.bf16 %v250_v28, %v246_v27  ;;  %v249_v33 = vld [vmem:[%s1206_s15 + $0xb0] sm:$0xff]  ;;  %v676_v34 = vpack.c.bf16 %v247_v31, %v243_v29  ;;  %v252_v35 = vld [vmem:[%s1206_s15 + $0xc8] sm:$0xff]  ;;  %v254_v37 = vld [vmem:[%s1206_s15 + $0xd8] sm:$0xff]  ;;  %p930_p12 = pneg %p929_p11 }
  0x60   : > { %673 = vmatpush1.bf16.msra.mxu0 %v672_v21  ;;  %v256_v36 = vld [vmem:[%s1206_s15 + $0xe8] sm:$0xff]  ;;  %v740_v38 = vpack.c.bf16 %v249_v33, %v245_v32  ;;  %v258_v40 = vld [vmem:[%s1206_s15 + $0xf8] sm:$0xff]  ;;  %v251_v41 = vld [vmem:[%s1206_s15 + $0xc0] sm:$0xff]  ;;  %p936_p0 = por %p935_p7, %p934_p6 }
  0x61   : > { %737 = vmatpush1.bf16.msra.mxu1 %v736_v25  ;;  %675 = vmatprep.subr.bf16.mxu0 %v674_v26  ;;  %v678_v39 = vpack.c.bf16 %v256_v36, %v252_v35  ;;  %v255_v42 = vld [vmem:[%s1206_s15 + $0xe0] sm:$0xff]  ;;  %v742_v43 = vpack.c.bf16 %v258_v40, %v254_v37  ;;  %v253_v44 = vld [vmem:[%s1206_s15 + $0xd0] sm:$0xff]  ;;  %v260_v46 = vld [vmem:[%s1206_s15 + $0x108] sm:$0xff] }
  0x62   : > { %739 = vmatprep.subr.bf16.mxu1 %v738_v30  ;;  %v257_v45 = vld [vmem:[%s1206_s15 + $0xf0] sm:$0xff]  ;;  %v264_v47 = vld [vmem:[%s1206_s15 + $0x128] sm:$0xff]  ;;  %v262_v48 = vld [vmem:[%s1206_s15 + $0x118] sm:$0xff]  ;;  %v680_v50 = vpack.c.bf16 %v255_v42, %v251_v41  ;;  %p937_p9 = pnand %p936_p0, %p930_p12 }
  0x63   : > { %v266_v49 = vld [vmem:[%s1206_s15 + $0x138] sm:$0xff]  ;;  %v744_v51 = vpack.c.bf16 %v257_v45, %v253_v44  ;;  %v682_v52 = vpack.c.bf16 %v264_v47, %v260_v46  ;;  %v259_v53 = vld [vmem:[%s1206_s15 + $0x100] sm:$0xff]  ;;  %v261_v55 = vld [vmem:[%s1206_s15 + $0x110] sm:$0xff] }
  0x64   : > { %677 = vmatpush1.bf16.msra.mxu0 %v676_v34  ;;  %v263_v54 = vld [vmem:[%s1206_s15 + $0x120] sm:$0xff]  ;;  %v746_v56 = vpack.c.bf16 %v266_v49, %v262_v48  ;;  %v265_v57 = vld [vmem:[%s1206_s15 + $0x130] sm:$0xff]  ;;  %v268_v58 = vld [vmem:[%s1206_s15 + $0x148] sm:$0xff] }
  0x65   : > { %741 = vmatpush1.bf16.msra.mxu1 %v740_v38  ;;  %679 = vmatprep.subr.bf16.mxu0 %v678_v39  ;;  %v272_v59 = vld [vmem:[%s1206_s15 + $0x168] sm:$0xff]  ;;  %v270_v60 = vld [vmem:[%s1206_s15 + $0x158] sm:$0xff]  ;;  %v684_v62 = vpack.c.bf16 %v263_v54, %v259_v53  ;;  %v748_v63 = vpack.c.bf16 %v265_v57, %v261_v55  ;;  %v267_v1 = vld [vmem:[%s1206_s15 + $0x140] sm:$0xff] }
  0x66   : > { %743 = vmatprep.subr.bf16.mxu1 %v742_v43  ;;  %v274_v61 = vld [vmem:[%s1206_s15 + $0x178] sm:$0xff]  ;;  %v686_v0 = vpack.c.bf16 %v272_v59, %v268_v58  ;;  %v271_v2 = vld [vmem:[%s1206_s15 + $0x160] sm:$0xff]  ;;  %v269_v3 = vld [vmem:[%s1206_s15 + $0x150] sm:$0xff] }
  0x67   : > { %v750_v4 = vpack.c.bf16 %v274_v61, %v270_v60  ;;  %v273_v5 = vld [vmem:[%s1206_s15 + $0x170] sm:$0xff]  ;;  %v276_v6 = vld [vmem:[%s1206_s15 + $0x188] sm:$0xff]  ;;  %v278_v8 = vld [vmem:[%s1206_s15 + $0x198] sm:$0xff]  ;;  %v688_v10 = vpack.c.bf16 %v271_v2, %v267_v1 }
  0x68   : > { %681 = vmatpush1.bf16.msra.mxu0 %v680_v50  ;;  %v280_v7 = vld [vmem:[%s1206_s15 + $0x1a8] sm:$0xff]  ;;  %v282_v9 = vld [vmem:[%s1206_s15 + $0x1b8] sm:$0xff]  ;;  %v752_v11 = vpack.c.bf16 %v273_v5, %v269_v3  ;;  %v275_v13 = vld [vmem:[%s1206_s15 + $0x180] sm:$0xff] }
  0x69   : > { %745 = vmatpush1.bf16.msra.mxu1 %v744_v51  ;;  %683 = vmatprep.subr.bf16.mxu0 %v682_v52  ;;  %v690_v12 = vpack.c.bf16 %v280_v7, %v276_v6  ;;  %v279_v14 = vld [vmem:[%s1206_s15 + $0x1a0] sm:$0xff]  ;;  %v277_v15 = vld [vmem:[%s1206_s15 + $0x190] sm:$0xff]  ;;  %v754_v16 = vpack.c.bf16 %v282_v9, %v278_v8  ;;  %v284_v18 = vld [vmem:[%s1206_s15 + $0x1c8] sm:$0xff] }
  0x6a   : > { %747 = vmatprep.subr.bf16.mxu1 %v746_v56  ;;  %v281_v17 = vld [vmem:[%s1206_s15 + $0x1b0] sm:$0xff]  ;;  %v288_v19 = vld [vmem:[%s1206_s15 + $0x1e8] sm:$0xff]  ;;  %v286_v20 = vld [vmem:[%s1206_s15 + $0x1d8] sm:$0xff]  ;;  %v692_v22 = vpack.c.bf16 %v279_v14, %v275_v13 }
  0x6b   : > { %v290_v21 = vld [vmem:[%s1206_s15 + $0x1f8] sm:$0xff]  ;;  %v756_v23 = vpack.c.bf16 %v281_v17, %v277_v15  ;;  %v694_v24 = vpack.c.bf16 %v288_v19, %v284_v18  ;;  %v283_v25 = vld [vmem:[%s1206_s15 + $0x1c0] sm:$0xff]  ;;  %v285_v27 = vld [vmem:[%s1206_s15 + $0x1d0] sm:$0xff] }
  0x6c   : > { %685 = vmatpush1.bf16.msra.mxu0 %v684_v62  ;;  %v287_v26 = vld [vmem:[%s1206_s15 + $0x1e0] sm:$0xff]  ;;  %v758_v28 = vpack.c.bf16 %v290_v21, %v286_v20  ;;  %v289_v29 = vld [vmem:[%s1206_s15 + $0x1f0] sm:$0xff]  ;;  %v292_v30 = vld [vmem:[%s1206_s15 + $0x208] sm:$0xff] }
  0x6d   : > { %749 = vmatpush1.bf16.msra.mxu1 %v748_v63  ;;  %687 = vmatprep.subr.bf16.mxu0 %v686_v0  ;;  %v296_v31 = vld [vmem:[%s1206_s15 + $0x228] sm:$0xff]  ;;  %v294_v32 = vld [vmem:[%s1206_s15 + $0x218] sm:$0xff]  ;;  %v696_v34 = vpack.c.bf16 %v287_v26, %v283_v25  ;;  %v760_v35 = vpack.c.bf16 %v289_v29, %v285_v27  ;;  %v291_v37 = vld [vmem:[%s1206_s15 + $0x200] sm:$0xff] }
  0x6e   : > { %751 = vmatprep.subr.bf16.mxu1 %v750_v4  ;;  %v298_v33 = vld [vmem:[%s1206_s15 + $0x238] sm:$0xff]  ;;  %v698_v36 = vpack.c.bf16 %v296_v31, %v292_v30  ;;  %v295_v38 = vld [vmem:[%s1206_s15 + $0x220] sm:$0xff]  ;;  %v293_v39 = vld [vmem:[%s1206_s15 + $0x210] sm:$0xff] }
  0x6f   : > { %v762_v40 = vpack.c.bf16 %v298_v33, %v294_v32  ;;  %v297_v41 = vld [vmem:[%s1206_s15 + $0x230] sm:$0xff]  ;;  %v300_v42 = vld [vmem:[%s1206_s15 + $0x248] sm:$0xff]  ;;  %v302_v44 = vld [vmem:[%s1206_s15 + $0x258] sm:$0xff]  ;;  %v700_v46 = vpack.c.bf16 %v295_v38, %v291_v37 }
  0x70   : > { %689 = vmatpush1.bf16.msra.mxu0 %v688_v10  ;;  %v304_v43 = vld [vmem:[%s1206_s15 + $0x268] sm:$0xff]  ;;  %v306_v45 = vld [vmem:[%s1206_s15 + $0x278] sm:$0xff]  ;;  %v764_v47 = vpack.c.bf16 %v297_v41, %v293_v39  ;;  %v299_v49 = vld [vmem:[%s1206_s15 + $0x240] sm:$0xff] }
  0x71   : > { %753 = vmatpush1.bf16.msra.mxu1 %v752_v11  ;;  %691 = vmatprep.subr.bf16.mxu0 %v690_v12  ;;  %v702_v48 = vpack.c.bf16 %v304_v43, %v300_v42  ;;  %v303_v50 = vld [vmem:[%s1206_s15 + $0x260] sm:$0xff]  ;;  %v301_v51 = vld [vmem:[%s1206_s15 + $0x250] sm:$0xff]  ;;  %v766_v52 = vpack.c.bf16 %v306_v45, %v302_v44  ;;  %v308_v54 = vld [vmem:[%s1206_s15 + $0x288] sm:$0xff] }
  0x72   : > { %755 = vmatprep.subr.bf16.mxu1 %v754_v16  ;;  %v305_v53 = vld [vmem:[%s1206_s15 + $0x270] sm:$0xff]  ;;  %v312_v55 = vld [vmem:[%s1206_s15 + $0x2a8] sm:$0xff]  ;;  %v310_v56 = vld [vmem:[%s1206_s15 + $0x298] sm:$0xff]  ;;  %v704_v58 = vpack.c.bf16 %v303_v50, %v299_v49 }
  0x73   : > { %v314_v57 = vld [vmem:[%s1206_s15 + $0x2b8] sm:$0xff]  ;;  %v768_v59 = vpack.c.bf16 %v305_v53, %v301_v51  ;;  %v706_v60 = vpack.c.bf16 %v312_v55, %v308_v54  ;;  %v307_v61 = vld [vmem:[%s1206_s15 + $0x280] sm:$0xff]  ;;  %v309_v63 = vld [vmem:[%s1206_s15 + $0x290] sm:$0xff] }
  0x74   : > { %693 = vmatpush1.bf16.msra.mxu0 %v692_v22  ;;  %v311_v62 = vld [vmem:[%s1206_s15 + $0x2a0] sm:$0xff]  ;;  %v770_v0 = vpack.c.bf16 %v314_v57, %v310_v56  ;;  %v313_v1 = vld [vmem:[%s1206_s15 + $0x2b0] sm:$0xff]  ;;  %v316_v2 = vld [vmem:[%s1206_s15 + $0x2c8] sm:$0xff] }
  0x75   : > { %757 = vmatpush1.bf16.msra.mxu1 %v756_v23  ;;  %695 = vmatprep.subr.bf16.mxu0 %v694_v24  ;;  %v320_v3 = vld [vmem:[%s1206_s15 + $0x2e8] sm:$0xff]  ;;  %v318_v4 = vld [vmem:[%s1206_s15 + $0x2d8] sm:$0xff]  ;;  %v708_v6 = vpack.c.bf16 %v311_v62, %v307_v61  ;;  %v315_v7 = vld [vmem:[%s1206_s15 + $0x2c0] sm:$0xff]  ;;  %v772_v8 = vpack.c.bf16 %v313_v1, %v309_v63 }
  0x76   : > { %759 = vmatprep.subr.bf16.mxu1 %v758_v28  ;;  %v322_v5 = vld [vmem:[%s1206_s15 + $0x2f8] sm:$0xff]  ;;  %v710_v9 = vpack.c.bf16 %v320_v3, %v316_v2  ;;  %v319_v10 = vld [vmem:[%s1206_s15 + $0x2e0] sm:$0xff]  ;;  %v317_v11 = vld [vmem:[%s1206_s15 + $0x2d0] sm:$0xff] }
  0x77   : > { %v321_v12 = vld [vmem:[%s1206_s15 + $0x2f0] sm:$0xff]  ;;  %v774_v13 = vpack.c.bf16 %v322_v5, %v318_v4  ;;  %v324_v14 = vld [vmem:[%s1206_s15 + $0x308] sm:$0xff]  ;;  %v326_v17 = vld [vmem:[%s1206_s15 + $0x318] sm:$0xff]  ;;  %v712_v19 = vpack.c.bf16 %v319_v10, %v315_v7 }
  0x78   : > { %697 = vmatpush1.bf16.msra.mxu0 %v696_v34  ;;  %v328_v15 = vld [vmem:[%s1206_s15 + $0x328] sm:$0xff]  ;;  %v330_v18 = vld [vmem:[%s1206_s15 + $0x338] sm:$0xff]  ;;  %v776_v20 = vpack.c.bf16 %v321_v12, %v317_v11  ;;  %v323_v22 = vld [vmem:[%s1206_s15 + $0x300] sm:$0xff] }
  0x79   : > { %761 = vmatpush1.bf16.msra.mxu1 %v760_v35  ;;  %699 = vmatprep.subr.bf16.mxu0 %v698_v36  ;;  %v224_v16 = vld [vmem:[%s1198_s29 + $0x8] sm:$0xff]  ;;  %v714_v21 = vpack.c.bf16 %v328_v15, %v324_v14  ;;  %v327_v23 = vld [vmem:[%s1206_s15 + $0x320] sm:$0xff]  ;;  %v325_v24 = vld [vmem:[%s1206_s15 + $0x310] sm:$0xff]  ;;  %v778_v25 = vpack.c.bf16 %v330_v18, %v326_v17 }
  0x7a   : > { %763 = vmatprep.subr.bf16.mxu1 %v762_v40  ;;  %419 = vmatprep.mubr.f32.mxu0 %v224_v16  ;;  %v329_v26 = vld [vmem:[%s1206_s15 + $0x330] sm:$0xff]  ;;  %v332_v27 = vld [vmem:[%s1206_s15 + $0x348] sm:$0xff]  ;;  %v334_v29 = vld [vmem:[%s1206_s15 + $0x358] sm:$0xff]  ;;  %v716_v31 = vpack.c.bf16 %v327_v23, %v323_v22 }
  0x7b   : > { %496 = vmatprep.mubr.f32.mxu1 %v224_v16  ;;  %v336_v28 = vld [vmem:[%s1206_s15 + $0x368] sm:$0xff]  ;;  %v338_v30 = vld [vmem:[%s1206_s15 + $0x378] sm:$0xff]  ;;  %v780_v32 = vpack.c.bf16 %v329_v26, %v325_v24  ;;  %v331_v34 = vld [vmem:[%s1206_s15 + $0x340] sm:$0xff] }
  0x7c   : > { %701 = vmatpush1.bf16.msra.mxu0 %v700_v46  ;;  %v718_v33 = vpack.c.bf16 %v336_v28, %v332_v27  ;;  %v335_v35 = vld [vmem:[%s1206_s15 + $0x360] sm:$0xff]  ;;  %v333_v36 = vld [vmem:[%s1206_s15 + $0x350] sm:$0xff]  ;;  %v782_v37 = vpack.c.bf16 %v338_v30, %v334_v29  ;;  %v340_v39 = vld [vmem:[%s1206_s15 + $0x388] sm:$0xff] }
  0x7d   : > { %765 = vmatpush1.bf16.msra.mxu1 %v764_v47  ;;  %703 = vmatprep.subr.bf16.mxu0 %v702_v48  ;;  %v337_v38 = vld [vmem:[%s1206_s15 + $0x370] sm:$0xff]  ;;  %v344_v40 = vld [vmem:[%s1206_s15 + $0x3a8] sm:$0xff]  ;;  %v342_v41 = vld [vmem:[%s1206_s15 + $0x398] sm:$0xff]  ;;  %v720_v43 = vpack.c.bf16 %v335_v35, %v331_v34 }
  0x7e   : > { %767 = vmatprep.subr.bf16.mxu1 %v766_v52  ;;  %v346_v42 = vld [vmem:[%s1206_s15 + $0x3b8] sm:$0xff]  ;;  %v784_v44 = vpack.c.bf16 %v337_v38, %v333_v36  ;;  %v722_v45 = vpack.c.bf16 %v344_v40, %v340_v39  ;;  %v339_v46 = vld [vmem:[%s1206_s15 + $0x380] sm:$0xff]  ;;  %v341_v48 = vld [vmem:[%s1206_s15 + $0x390] sm:$0xff] }
  0x7f   : > { %v343_v47 = vld [vmem:[%s1206_s15 + $0x3a0] sm:$0xff]  ;;  %v786_v49 = vpack.c.bf16 %v346_v42, %v342_v41  ;;  %v345_v50 = vld [vmem:[%s1206_s15 + $0x3b0] sm:$0xff]  ;;  %v348_v51 = vld [vmem:[%s1206_s15 + $0x3c8] sm:$0xff] }
  0x80   : > { %705 = vmatpush1.bf16.msra.mxu0 %v704_v58  ;;  %v352_v52 = vld [vmem:[%s1206_s15 + $0x3e8] sm:$0xff]  ;;  %v350_v53 = vld [vmem:[%s1206_s15 + $0x3d8] sm:$0xff]  ;;  %v724_v55 = vpack.c.bf16 %v343_v47, %v339_v46  ;;  %v788_v56 = vpack.c.bf16 %v345_v50, %v341_v48  ;;  %v347_v58 = vld [vmem:[%s1206_s15 + $0x3c0] sm:$0xff] }
  0x81   : > { %769 = vmatpush1.bf16.msra.mxu1 %v768_v59  ;;  %707 = vmatprep.subr.bf16.mxu0 %v706_v60  ;;  %v354_v54 = vld [vmem:[%s1206_s15 + $0x3f8] sm:$0xff]  ;;  %v726_v57 = vpack.c.bf16 %v352_v52, %v348_v51  ;;  %v351_v59 = vld [vmem:[%s1206_s15 + $0x3e0] sm:$0xff]  ;;  %v349_v61 = vld [vmem:[%s1206_s15 + $0x3d0] sm:$0xff] }
  0x82   : > { %771 = vmatprep.subr.bf16.mxu1 %v770_v0  ;;  %v790_v60 = vpack.c.bf16 %v354_v54, %v350_v53  ;;  %v353_v62 = vld [vmem:[%s1206_s15 + $0x3f0] sm:$0xff]  ;;  %v728_v63 = vpack.c.bf16 %v351_v59, %v347_v58  ;;  %v223_v1 = vld [vmem:[%s1198_s29] sm:$0xff]  ;;  %v226_v2 = vld [vmem:[%s1198_s29 + $0x18] sm:$0xff] }
  0x83   : > { %v792_v0 = vpack.c.bf16 %v353_v62, %v349_v61  ;;  %v225_v3 = vld [vmem:[%s1198_s29 + $0x10] sm:$0xff] }
  0x84   : > { %709 = vmatpush1.bf16.msra.mxu0 %v708_v6 }
  0x85   : > { %773 = vmatpush1.bf16.msra.mxu1 %v772_v8  ;;  %711 = vmatprep.subr.bf16.mxu0 %v710_v9 }
  0x86   : > { %775 = vmatprep.subr.bf16.mxu1 %v774_v13 }
  0x88   : > { %713 = vmatpush1.bf16.msra.mxu0 %v712_v19 }
  0x89   : > { %777 = vmatpush1.bf16.msra.mxu1 %v776_v20  ;;  %715 = vmatprep.subr.bf16.mxu0 %v714_v21 }
  0x8a   : > { %779 = vmatprep.subr.bf16.mxu1 %v778_v25 }
  0x8c   : > { %717 = vmatpush1.bf16.msra.mxu0 %v716_v31 }
  0x8d   : > { %781 = vmatpush1.bf16.msra.mxu1 %v780_v32  ;;  %719 = vmatprep.subr.bf16.mxu0 %v718_v33 }
  0x8e   : > { %783 = vmatprep.subr.bf16.mxu1 %v782_v37 }
  0x90   : > { %721 = vmatpush1.bf16.msra.mxu0 %v720_v43 }
  0x91   : > { %785 = vmatpush1.bf16.msra.mxu1 %v784_v44  ;;  %723 = vmatprep.subr.bf16.mxu0 %v722_v45 }
  0x92   : > { %787 = vmatprep.subr.bf16.mxu1 %v786_v49 }
  0x94   : > { %725 = vmatpush1.bf16.msra.mxu0 %v724_v55 }
  0x95   : > { %789 = vmatpush1.bf16.msra.mxu1 %v788_v56  ;;  %727 = vmatprep.subr.bf16.mxu0 %v726_v57 }
  0x96   : > { %791 = vmatprep.subr.bf16.mxu1 %v790_v60 }
  0x98   : > { %729 = vmatpush1.bf16.msra.mxu0 %v728_v63 }
  0x99   : > { %793 = vmatpush1.bf16.msra.mxu1 %v792_v0 }
  0x9b   : > { %420 = vmatmul.mubr.f32.vlgmr.msra.gmra.mrb[0].mxu0 %v223_v1 }
  0x9c   : > { %497 = vmatmul.mubr.f32.vlgmr.msra.gmra.mrb[0].mxu1 %v223_v1  ;;  %425 = vmatprep.mubr.f32.mxu0 %v226_v2 }
  0x9d   : > { %502 = vmatprep.mubr.f32.mxu1 %v226_v2 }
  0x9f   : > { %426 = vmatmul.mubr.f32.gmra.mrb[2].mxu0 %v225_v3 }
  0xa0   : > { %503 = vmatmul.mubr.f32.gmra.mrb[2].mxu1 %v225_v3 }
 0x16e   : > { %v421_v4 = vpop.f32.mrb[0].mxu0 }
 0x16f   : > { %509 = vst [vmem:[%s220_s19] sm:$0xff] %v421_v4  ;;  %v498_v5 = vpop.f32.mrb[0].mxu1  ;;  %v423_v6 = vpop.f32.mrb[1].mxu0 }
 0x170   : > { %511 = vst [vmem:[%s220_s19 + $0x10] sm:$0xff] %v498_v5  ;;  %510 = vst [vmem:[%s220_s19 + $0x8] sm:$0xff] %v423_v6  ;;  %v500_v7 = vpop.f32.mrb[1].mxu1 }
 0x171   : > { %512 = vst [vmem:[%s220_s19 + $0x18] sm:$0xff] %v500_v7 }
 0x172   : > { %v427_v8 = vpop.f32.mrb[2].mxu0 }
 0x173   : > { %513 = vst [vmem:[%s220_s19 + $0x20] sm:$0xff] %v427_v8  ;;  %v504_v9 = vpop.f32.mrb[2].mxu1  ;;  %v429_v10 = vpop.f32.mrb[3].mxu0 }
 0x174   : > { %515 = vst [vmem:[%s220_s19 + $0x30] sm:$0xff] %v504_v9  ;;  %514 = vst [vmem:[%s220_s19 + $0x28] sm:$0xff] %v429_v10  ;;  %v506_v11 = vpop.f32.mrb[3].mxu1 }
 0x175   : > { %516 = vst [vmem:[%s220_s19 + $0x38] sm:$0xff] %v506_v11 }
 0x176   : > { %940 = shalt.err (!%p937_p9)
}
 0x177   : > { %s941_s27 = scalar_lea.hbm %s1351_s8, 1024  ;;  %s945_s25 = scalar_lea.hbm %s1401_s2, 3072 }
 0x178   : > { %p942_p5 = scmp.ne.s32.totalorder %s1351_s8, %s941_s27  ;;  %p946_p3 = scmp.lt.u32.totalorder %s1351_s8, %s1401_s2 }
 0x179   : > { %p947_p4 = scmp.lt.u32.totalorder %s945_s25, %s941_s27  ;;  %p949_p13 = scmp.lt.u32.totalorder %s941_s27, %s1351_s8 }
 0x17a   : > { %p943_p10 = pnand %p942_p5, %p1412_p2 }
 0x17b   : > { %p948_p8 = por %p947_p4, %p946_p3 }
 0x17c   : > { %p944_p1 = pneg %p943_p10 }
 0x17d   : > { %p950_p11 = por %p949_p13, %p948_p8 }
 0x17f   : > { %p951_p12 = pnand %p950_p11, %p944_p1 }
 0x181   : > { %954 = shalt.err (!%p951_p12)
}
 0x182   : > { %s1022_s21 = smov 512   ;;  %s1023_s19 = smov 32  }
 0x183   : > { %798 = dma.vmem_to_hbm [thread:$0]  (%p1412_p2), %s1346_s26, 1024, %s1351_s8, %s518_s12, %s1022_s21, %s1022_s21, %s1023_s19  }
 0x184 PF: > { %p812_p6 = scmp.ge.s32.totalorder %s1013_s14, 2  ;;  %s549_s30 = sand.u32 1, %s993_s9  }
 0x185   : > { %p1413_p7 = scmp.ne.s32.totalorder %s1407_s24, 0  ;;  %s550_s3 = scalar_lea.sflag [#allocation4], %s549_s30 }
 0x187   : > { %p808_p0 = pnand %p812_p6, %p1413_p7 }
 0x189   : > { %988 = dma.done.wait (!%p808_p0), %s550_s3, 1024  }
 0x18a   : > { %990 = vsyncadd (!%p808_p0), %s550_s3, 4294966272  ;;  %s21_s14 = sadd.s32 1, %s1013_s14   ;;  %s1414_s9 = smov %s997_s10 }
 0x18b   : > { %p18_p9 = scmp.ge.s32.totalorder %s21_s14, 5   ;;  %s1415_s10 = smov %s1001_s11 }
 0x18c   : > { %s1416_s11 = smov %s1095_s23  ;;  %s1417_s12 = smov %s1009_s13 }
 0x18d   : > { %s1418_s13 = smov %s1420_s17  ;;  %20 = sbr.rel (!%p18_p9) target bundleno = 8 (0x8), region = 86 }
 0x194   :  { %555 = vsyncpa [#allocation3], 1 }
 0x195   :  { %557 = vsyncpa [#allocation3 + $0x1], 1 }
 0x196   :  { %558 = vsyncpa [#allocation6], 1 }
 0x197   :  { %560 = vsyncpa [#allocation6 + $0x1], 1 }
 0x198   :  { %561 = vsyncpa [#allocation4], 1 }
 0x199   :  { %563 = vsyncpa [#allocation4 + $0x1], 1 }

</bundles_post_ra>
